<compile_context>
chip_gen: v7x
topology: tpu7x:2x2x1
jax: 0.10.0
libtpu: 0.0.40
codegen_flags: <defaults>
</compile_context>

<pallas_src>
import functools

import jax
import jax.numpy as jnp
from jax.experimental import pallas as pl
from jax.experimental.pallas import tpu as pltpu


def _round_up(n: int, m: int) -> int:
    return ((n + m - 1) // m) * m


# --------------------------------------------------------------------------
# Kernel: one batch tile through the whole 3-layer MLP.
# --------------------------------------------------------------------------
def mlp_kernel(x_ref, w1_ref, b1_ref, w2_ref, b2_ref, w3_ref, b3_ref, o_ref):
    # Layer 1: relu(x @ W1 + b1)  -- bf16 MXU inputs, f32 accumulate/epilogue.
    x = x_ref[...].astype(jnp.bfloat16)          # no-op if x already bf16
    h = jnp.dot(x, w1_ref[...], preferred_element_type=jnp.float32)
    h = jnp.maximum(h + b1_ref[...], 0.0)
    # Layer 2: relu(h @ W2 + b2)
    h = jnp.dot(h.astype(jnp.bfloat16), w2_ref[...],
                preferred_element_type=jnp.float32)
    h = jnp.maximum(h + b2_ref[...], 0.0)
    # Output layer: h @ W3 + b3 (no activation)
    out = jnp.dot(h.astype(jnp.bfloat16), w3_ref[...],
                  preferred_element_type=jnp.float32)
    o_ref[...] = (out + b3_ref[...]).astype(o_ref.dtype)


# --------------------------------------------------------------------------
# Wrapper: batch-tiled pipeline, no extra HBM passes around the kernel.
# --------------------------------------------------------------------------
@functools.partial(jax.jit, static_argnames=("block_b",))
def megamillions_mlp(x, params, *, block_b=2048):
    """x: [B, 95] float32 or bfloat16.  params: prepare_params(...) output."""
    w1, b1 = params["w1"], params["b1"]
    w2, b2 = params["w2"], params["b2"]
    w3, b3 = params["w3"], params["b3"]

    B, in_dim = x.shape
    hid = w1.shape[1]
    out_dim = w3.shape[1]

    # Batch tile: a multiple of the sublane tile for x's dtype; at least 2
    # grid steps when B is large (so v7x's two TensorCores both get work).
    # The ragged last block is handled by Pallas (OOB rows never written).
    sub = 8 * max(1, 4 // x.dtype.itemsize)      # 8 for f32, 16 for bf16
    if B <= sub:
        tb = B                                   # block == full dim (legal)
    else:
        tb = min(block_b, _round_up((B + 1) // 2, sub))
    grid = (pl.cdiv(B, tb),)

    flops = 2 * B * (in_dim * hid + hid * hid + hid * out_dim)
    bytes_accessed = (
        x.dtype.itemsize * B * (in_dim + out_dim)                 # x, out streams
        + 2 * (in_dim * hid + hid * hid + hid * out_dim)          # bf16 weights
        + 4 * (2 * hid + out_dim)                                 # f32 biases
    )

    return pl.pallas_call(
        mlp_kernel,
        out_shape=jax.ShapeDtypeStruct((B, out_dim), x.dtype),
        grid=grid,
        in_specs=[
            pl.BlockSpec((tb, in_dim), lambda i: (i, 0)),     # x: batch-tiled stream
            pl.BlockSpec((in_dim, hid), lambda i: (0, 0)),    # W1: VMEM-resident
            pl.BlockSpec((1, hid), lambda i: (0, 0)),         # b1: resident
            pl.BlockSpec((hid, hid), lambda i: (0, 0)),       # W2: resident
            pl.BlockSpec((1, hid), lambda i: (0, 0)),         # b2: resident
            pl.BlockSpec((hid, out_dim), lambda i: (0, 0)),   # W3: resident
            pl.BlockSpec((1, out_dim), lambda i: (0, 0)),     # b3: resident
        ],
        out_specs=pl.BlockSpec((tb, out_dim), lambda i: (i, 0)),
        compiler_params=pltpu.CompilerParams(
            dimension_semantics=("parallel",),    # shard batch tiles across TCs
            vmem_limit_bytes=32 * 1024 * 1024,    # ample up to TB~4096; < v7x phys
        ),
        cost_estimate=pl.CostEstimate(
            flops=flops, transcendentals=0, bytes_accessed=bytes_accessed),
    )(x, w1, b1, w2, b2, w3, b3)


# --------------------------------------------------------------------------
# Parameter helpers
# --------------------------------------------------------------------------
def init_params(key, input_dim=95, hidden_dim=128, output_dim=95):
    """torch.nn.Linear-style init (uniform +/- 1/sqrt(fan_in)); weights stored
    transposed ([in, out]) so the kernel computes x @ W (== PyTorch x @ W.T)."""
    k1, k2, k3, k4, k5, k6 = jax.random.split(key, 6)

    def linear(kw, kb, fan_in, fan_out):
        bound = 1.0 / jnp.sqrt(fan_in)
        w = jax.random.uniform(kw, (fan_in, fan_out), jnp.float32, -bound, bound)
        b = jax.random.uniform(kb, (1, fan_out), jnp.float32, -bound, bound)
        return w, b

    w1, b1 = linear(k1, k2, input_dim, hidden_dim)
    w2, b2 = linear(k3, k4, hidden_dim, hidden_dim)
    w3, b3 = linear(k5, k6, hidden_dim, output_dim)
    return {"w1": w1, "b1": b1, "w2": w2, "b2": b2, "w3": w3, "b3": b3}


def prepare_params(p):
    """Weights -> bf16 (MXU-native); biases stay f32 for the epilogue.
    No padding: logical feature dims are used directly by the kernel."""
    return {
        "w1": p["w1"].astype(jnp.bfloat16), "b1": p["b1"],
        "w2": p["w2"].astype(jnp.bfloat16), "b2": p["b2"],
        "w3": p["w3"].astype(jnp.bfloat16), "b3": p["b3"],
    }


# --------------------------------------------------------------------------
# References
# --------------------------------------------------------------------------
def reference_mlp_f32(x, p):
    """Pure-f32 reference == the original PyTorch module."""
    h = jnp.maximum(x @ p["w1"] + p["b1"], 0.0)
    h = jnp.maximum(h @ p["w2"] + p["b2"], 0.0)
    return h @ p["w3"] + p["b3"]


def reference_mlp_matched(x, pp):
    """Reference with the same bf16-input / f32-accumulate math as the kernel."""
    h = jnp.maximum(jnp.dot(x.astype(jnp.bfloat16), pp["w1"],
                            preferred_element_type=jnp.float32) + pp["b1"], 0.0)
    h = jnp.maximum(jnp.dot(h.astype(jnp.bfloat16), pp["w2"],
                            preferred_element_type=jnp.float32) + pp["b2"], 0.0)
    return jnp.dot(h.astype(jnp.bfloat16), pp["w3"],
                   preferred_element_type=jnp.float32) + pp["b3"]


if __name__ == "__main__":
    key = jax.random.PRNGKey(0)
    kx, kx2, kp = jax.random.split(key, 3)

    input_dim, hidden_dim, output_dim = 95, 128, 95

    logical = init_params(kp, input_dim, hidden_dim, output_dim)
    params = prepare_params(logical)

    # --- small batch, f32 input (matches the PyTorch module) ----------------
    x = jax.random.normal(kx, (8, input_dim), jnp.float32)
    out = jax.block_until_ready(megamillions_mlp(x, params))
    assert out.shape == (8, output_dim), out.shape
    assert jnp.allclose(out, reference_mlp_matched(x, params),
                        atol=1e-3, rtol=1e-3), "mismatch vs bf16-matched reference"
    assert jnp.allclose(out, reference_mlp_f32(x, logical),
                        atol=3e-2, rtol=3e-2), "mismatch vs f32 reference"

    # --- multi-step grid with a ragged last batch block ---------------------
    x_big = jax.random.normal(kx2, (300, input_dim), jnp.float32)
    out_big = jax.block_until_ready(megamillions_mlp(x_big, params, block_b=128))
    assert out_big.shape == (300, output_dim), out_big.shape
    assert jnp.allclose(out_big, reference_mlp_matched(x_big, params),
                        atol=1e-3, rtol=1e-3), "mismatch on ragged multi-tile batch"

    # --- bf16 input stream (halves the dominant HBM read; identical math) ---
    out_bf16 = jax.block_until_ready(megamillions_mlp(x.astype(jnp.bfloat16), params))
    assert out_bf16.dtype == jnp.bfloat16
    assert jnp.allclose(out_bf16.astype(jnp.float32), reference_mlp_matched(x, params),
                        atol=1e-2, rtol=1e-2), "mismatch on bf16-streamed input"

    print("KERNEL_OK")
</pallas_src>

<mosaic_0001>
module attributes {stable_mosaic.version = 11 : i64} {
  func.func @mlp_kernel(%arg0: i32, %arg1: memref<8x95xf32, #tpu.memory_space<vmem>>, %arg2: memref<95x128xbf16, #tpu.memory_space<vmem>>, %arg3: memref<1x128xf32, #tpu.memory_space<vmem>>, %arg4: memref<128x128xbf16, #tpu.memory_space<vmem>>, %arg5: memref<1x128xf32, #tpu.memory_space<vmem>>, %arg6: memref<128x95xbf16, #tpu.memory_space<vmem>>, %arg7: memref<1x95xf32, #tpu.memory_space<vmem>>, %arg8: memref<8x95xf32, #tpu.memory_space<vmem>>) attributes {dimension_semantics = [#tpu.dimension_semantics<parallel>], iteration_bounds = array<i64: 1>, scalar_prefetch = 0 : i64, scratch_operands = 0 : i64, tpu.core_type = #tpu.core_type<tc>, window_params = [{transform_indices = @transform_0, window_bounds = array<i64: 8, 95>}, {pipeline_mode = #tpu.pipeline_mode<synchronous>, transform_indices = @transform_1, window_bounds = array<i64: 95, 128>}, {pipeline_mode = #tpu.pipeline_mode<synchronous>, transform_indices = @transform_2, window_bounds = array<i64: 1, 128>}, {pipeline_mode = #tpu.pipeline_mode<synchronous>, transform_indices = @transform_3, window_bounds = array<i64: 128, 128>}, {pipeline_mode = #tpu.pipeline_mode<synchronous>, transform_indices = @transform_4, window_bounds = array<i64: 1, 128>}, {pipeline_mode = #tpu.pipeline_mode<synchronous>, transform_indices = @transform_5, window_bounds = array<i64: 128, 95>}, {pipeline_mode = #tpu.pipeline_mode<synchronous>, transform_indices = @transform_6, window_bounds = array<i64: 1, 95>}, {transform_indices = @transform_7, window_bounds = array<i64: 8, 95>}]} {
    %c0 = arith.constant 0 : index
    %c0_0 = arith.constant 0 : index
    %0 = vector.load %arg1[%c0, %c0_0] : memref<8x95xf32, #tpu.memory_space<vmem>>, vector<8x95xf32>
    %1 = arith.truncf %0 : vector<8x95xf32> to vector<8x95xbf16>
    %c0_1 = arith.constant 0 : index
    %c0_2 = arith.constant 0 : index
    %2 = vector.load %arg2[%c0_1, %c0_2] : memref<95x128xbf16, #tpu.memory_space<vmem>>, vector<95x128xbf16>
    %cst = arith.constant dense<0.000000e+00> : vector<8x128xf32>
    %3 = tpu.matmul %1, %2, %cst {dimension_numbers = #tpu.dot_dimension_numbers<[1], [0], [0], [1], [0, 0, 1, 1], [], []>} : vector<8x95xbf16>, vector<95x128xbf16>, vector<8x128xf32> -> vector<8x128xf32>
    %c0_3 = arith.constant 0 : index
    %c0_4 = arith.constant 0 : index
    %4 = vector.load %arg3[%c0_3, %c0_4] : memref<1x128xf32, #tpu.memory_space<vmem>>, vector<1x128xf32>
    %5 = vector.broadcast %4 : vector<1x128xf32> to vector<8x128xf32>
    %6 = arith.addf %3, %5 : vector<8x128xf32>
    %cst_5 = arith.constant 0.000000e+00 : f32
    %7 = vector.broadcast %cst_5 : f32 to vector<8x128xf32>
    %8 = arith.maximumf %6, %7 : vector<8x128xf32>
    %9 = arith.truncf %8 : vector<8x128xf32> to vector<8x128xbf16>
    %c0_6 = arith.constant 0 : index
    %c0_7 = arith.constant 0 : index
    %10 = vector.load %arg4[%c0_6, %c0_7] : memref<128x128xbf16, #tpu.memory_space<vmem>>, vector<128x128xbf16>
    %cst_8 = arith.constant dense<0.000000e+00> : vector<8x128xf32>
    %11 = tpu.matmul %9, %10, %cst_8 {dimension_numbers = #tpu.dot_dimension_numbers<[1], [0], [0], [1], [0, 0, 1, 1], [], []>} : vector<8x128xbf16>, vector<128x128xbf16>, vector<8x128xf32> -> vector<8x128xf32>
    %c0_9 = arith.constant 0 : index
    %c0_10 = arith.constant 0 : index
    %12 = vector.load %arg5[%c0_9, %c0_10] : memref<1x128xf32, #tpu.memory_space<vmem>>, vector<1x128xf32>
    %13 = vector.broadcast %12 : vector<1x128xf32> to vector<8x128xf32>
    %14 = arith.addf %11, %13 : vector<8x128xf32>
    %cst_11 = arith.constant 0.000000e+00 : f32
    %15 = vector.broadcast %cst_11 : f32 to vector<8x128xf32>
    %16 = arith.maximumf %14, %15 : vector<8x128xf32>
    %17 = arith.truncf %16 : vector<8x128xf32> to vector<8x128xbf16>
    %c0_12 = arith.constant 0 : index
    %c0_13 = arith.constant 0 : index
    %18 = vector.load %arg6[%c0_12, %c0_13] : memref<128x95xbf16, #tpu.memory_space<vmem>>, vector<128x95xbf16>
    %cst_14 = arith.constant dense<0.000000e+00> : vector<8x95xf32>
    %19 = tpu.matmul %17, %18, %cst_14 {dimension_numbers = #tpu.dot_dimension_numbers<[1], [0], [0], [1], [0, 0, 1, 1], [], []>} : vector<8x128xbf16>, vector<128x95xbf16>, vector<8x95xf32> -> vector<8x95xf32>
    %c0_15 = arith.constant 0 : index
    %c0_16 = arith.constant 0 : index
    %20 = vector.load %arg7[%c0_15, %c0_16] : memref<1x95xf32, #tpu.memory_space<vmem>>, vector<1x95xf32>
    %21 = vector.broadcast %20 : vector<1x95xf32> to vector<8x95xf32>
    %22 = arith.addf %19, %21 : vector<8x95xf32>
    %c0_17 = arith.constant 0 : index
    %c0_18 = arith.constant 0 : index
    %23 = vector.load %arg8[%c0_17, %c0_18] : memref<8x95xf32, #tpu.memory_space<vmem>>, vector<8x95xf32>
    tpu.vector_store %arg8[%c0_17, %c0_18], %22 {strides = array<i32>} : memref<8x95xf32, #tpu.memory_space<vmem>>, vector<8x95xf32>,
    return
  }
  func.func @transform_0(%arg0: i32) -> (i32, i32) {
    %c0_i32 = arith.constant 0 : i32
    %c0_i32_0 = arith.constant 0 : i32
    return %arg0, %c0_i32 : i32, i32
  }
  func.func @transform_1(%arg0: i32) -> (i32, i32) {
    %c0_i32 = arith.constant 0 : i32
    %c0_i32_0 = arith.constant 0 : i32
    %c0_i32_1 = arith.constant 0 : i32
    return %c0_i32, %c0_i32_0 : i32, i32
  }
  func.func @transform_2(%arg0: i32) -> (i32, i32) {
    %c0_i32 = arith.constant 0 : i32
    %c0_i32_0 = arith.constant 0 : i32
    %c0_i32_1 = arith.constant 0 : i32
    return %c0_i32, %c0_i32_0 : i32, i32
  }
  func.func @transform_3(%arg0: i32) -> (i32, i32) {
    %c0_i32 = arith.constant 0 : i32
    %c0_i32_0 = arith.constant 0 : i32
    %c0_i32_1 = arith.constant 0 : i32
    return %c0_i32, %c0_i32_0 : i32, i32
  }
  func.func @transform_4(%arg0: i32) -> (i32, i32) {
    %c0_i32 = arith.constant 0 : i32
    %c0_i32_0 = arith.constant 0 : i32
    %c0_i32_1 = arith.constant 0 : i32
    return %c0_i32, %c0_i32_0 : i32, i32
  }
  func.func @transform_5(%arg0: i32) -> (i32, i32) {
    %c0_i32 = arith.constant 0 : i32
    %c0_i32_0 = arith.constant 0 : i32
    %c0_i32_1 = arith.constant 0 : i32
    return %c0_i32, %c0_i32_0 : i32, i32
  }
  func.func @transform_6(%arg0: i32) -> (i32, i32) {
    %c0_i32 = arith.constant 0 : i32
    %c0_i32_0 = arith.constant 0 : i32
    %c0_i32_1 = arith.constant 0 : i32
    return %c0_i32, %c0_i32_0 : i32, i32
  }
  func.func @transform_7(%arg0: i32) -> (i32, i32) {
    %c0_i32 = arith.constant 0 : i32
    %c0_i32_0 = arith.constant 0 : i32
    return %arg0, %c0_i32 : i32, i32
  }
}

</mosaic_0001>

<bundles_post_ra>
// kernel: megamillions_mlp.1
= control target key start
LH: loop header
LB: loop body
LE: loop exit
PB: predicated region body
PF: predicated region fallthrough
CT: control target
= control target key end

     0   :  { %v533_v1 = vmov 0.0   ;;  %vm88_vm0 = vcmask 1046528   ;;  %vm534_vm1 = vmmov 0   ;;  %vm89_vm2 = vcmask 1047552   ;;  %s697_s0 = inlined_call_operand.vmem [shape: f32[8,95], index: 0, kind: input, shape index: {}]   ;;  %s698_s1 = inlined_call_operand.vmem [shape: bf16[95,128], index: 1, kind: input, shape index: {}]   ;;  %s699_s2 = inlined_call_operand.vmem [shape: f32[1,128], index: 2, kind: input, shape index: {}]   ;;  %s700_s3 = inlined_call_operand.vmem [shape: bf16[128,128], index: 3, kind: input, shape index: {}]   ;;  %s701_s4 = inlined_call_operand.vmem [shape: f32[1,128], index: 4, kind: input, shape index: {}]   ;;  %s702_s5 = inlined_call_operand.vmem [shape: bf16[128,95], index: 5, kind: input, shape index: {}]   ;;  %s703_s6 = inlined_call_operand.vmem [shape: f32[1,95], index: 6, kind: input, shape index: {}]   ;;  %s704_s7 = inlined_call_operand.hbm [shape: f32[8,95], index: 7, kind: output, shape index: {}]  }
   0x1   :  { %v487_v0 = vld [vmem:[%s698_s1] sm:$0xff]   ;;  %427 = vmatprep.subr.bf16.mxu0 %v533_v1  ;;  %443 = vmatprep.subr.bf16.mxu1 %v533_v1  ;;  %v488_v2 = vld [vmem:[%s698_s1 + $0x8] sm:$0xff]   ;;  %v489_v3 = vld [vmem:[%s698_s1 + $0x10] sm:$0xff]   ;;  %v535_v6 = vmov 65535  }
   0x2   :  { %428 = vmatpush3.bf16.msra.mxu0 %v487_v0  ;;  %v493_v4 = vld [vmem:[%s700_s3] sm:$0xff]   ;;  %439 = vmatprep.mubr.msk.bf16.mxu0 %vm534_vm1, %v533_v1  ;;  %v494_v5 = vld [vmem:[%s700_s3 + $0x8] sm:$0xff]   ;;  %v90_v7 = vsel %vm88_vm0, 4294967295, %v535_v6  ;;  %v490_v8 = vld [vmem:[%s698_s1 + $0x18] sm:$0xff]  }
   0x3   :  { %429 = vmatprep.subr.bf16.mxu0 %v533_v1  ;;  %444 = vmatpush3.bf16.msra.mxu1 %v493_v4  ;;  %v491_v9 = vld [vmem:[%s698_s1 + $0x20] sm:$0xff]   ;;  %v492_v10 = vld [vmem:[%s698_s1 + $0x28] sm:$0xff]   ;;  %v91_v11 = vsel %vm89_vm2, %v90_v7, 0  ;;  %v495_v12 = vld [vmem:[%s700_s3 + $0x10] sm:$0xff]  }
   0x4   :  { %459 = vmatprep.mubr.msk.bf16.mxu1 %vm534_vm1, %v533_v1  ;;  %445 = vmatprep.subr.bf16.mxu1 %v533_v1  ;;  %v496_v13 = vld [vmem:[%s700_s3 + $0x18] sm:$0xff]   ;;  %v28_v14 = vld [vmem:[%s697_s0] sm:$0xff]  ;;  %v93_v15 = vand.u32 %v492_v10, %v91_v11 }
   0x6   :  { %430 = vmatpush3.bf16.msra.mxu0 %v488_v2 }
   0x7   :  { %431 = vmatprep.subr.bf16.mxu0 %v533_v1  ;;  %446 = vmatpush3.bf16.msra.mxu1 %v494_v5 }
   0x8   :  { %447 = vmatprep.subr.bf16.mxu1 %v533_v1 }
   0xa   :  { %432 = vmatpush3.bf16.msra.mxu0 %v489_v3 }
   0xb   :  { %433 = vmatprep.subr.bf16.mxu0 %v533_v1  ;;  %448 = vmatpush3.bf16.msra.mxu1 %v495_v12 }
   0xc   :  { %449 = vmatprep.subr.bf16.mxu1 %v533_v1 }
   0xe   :  { %434 = vmatpush3.bf16.msra.mxu0 %v490_v8 }
   0xf   :  { %435 = vmatprep.subr.bf16.mxu0 %v533_v1 }
  0x12   :  { %436 = vmatpush3.bf16.msra.mxu0 %v491_v9 }
  0x13   :  { %437 = vmatprep.subr.bf16.mxu0 %v533_v1 }
  0x14   :  { %12 = vsyncpa [#allocation3], 0  ;;  %450 = vmatpush3.bf16.msra.mxu1 %v496_v13  ;;  %v497_v16 = vld [vmem:[%s700_s3 + $0x20] sm:$0xff]   ;;  %v29_v17 = vpack.c.bf16 %v28_v14, %v28_v14  ;;  %vm84_vm3 = vcmask 777216   ;;  %v498_v18 = vld [vmem:[%s700_s3 + $0x28] sm:$0xff]   ;;  %s536_s24 = smov [#allocation2]  }
  0x15   :  { %451 = vmatprep.subr.bf16.mxu1 %v533_v1  ;;  %v499_v19 = vld [vmem:[%s700_s3 + $0x30] sm:$0xff]   ;;  %v500_v20 = vld [vmem:[%s700_s3 + $0x38] sm:$0xff]   ;;  %v501_v21 = vld [vmem:[%s702_s5] sm:$0xff]   ;;  %s368_s25 = sshll.u32 %s536_s24, 4  ;;  %s369_s25 = int_to_ptr.vmem [resolvable:$true] %s368_s25 }
  0x16   :  { %438 = vmatpush3.bf16.msra.mxu0 %v93_v15  ;;  %v502_v22 = vld [vmem:[%s702_s5 + $0x8] sm:$0xff]   ;;  %v503_v23 = vld [vmem:[%s702_s5 + $0x10] sm:$0xff]   ;;  %v504_v24 = vld [vmem:[%s702_s5 + $0x18] sm:$0xff]   ;;  %p514_p1 = scmp.lt.s32.totalorder %s369_s25, %s369_s25 }
  0x17   :  { %463 = vmatprep.subr.bf16.mxu0 %v533_v1  ;;  %v505_v25 = vld [vmem:[%s702_s5 + $0x20] sm:$0xff]   ;;  %v506_v26 = vld [vmem:[%s702_s5 + $0x28] sm:$0xff]   ;;  %v507_v35 = vld [vmem:[%s702_s5 + $0x30] sm:$0xff]  }
  0x18   :  { %452 = vmatpush3.bf16.msra.mxu1 %v497_v16  ;;  %v376_v27 = vld [vmem:[%s699_s2] ss:$0 sm:$0xff]  ;;  %v508_v36 = vld [vmem:[%s702_s5 + $0x38] sm:$0xff]  }
  0x19   :  { %440 = vmatmul.mubr.msk.bf16.vlgmr.msra.gmra.mrb[0].mxu0 %vm84_vm3, %v29_v17  ;;  %453 = vmatprep.subr.bf16.mxu1 %v533_v1  ;;  %v384_v37 = vld [vmem:[%s701_s4] ss:$0 sm:$0xff]  ;;  %s509_s4 = scalar_lea.vmem %s369_s25, 128 }
  0x1a   :  { %479 = vmatprep.mubr.msk.bf16.mxu0 %vm534_vm1, %v533_v1  ;;  %464 = vmatpush3.bf16.msra.mxu0 %v501_v21  ;;  %v393_v45 = vld [vmem:[%s703_s6] ss:$0 sm:$0xff]  ;;  %p510_p0 = scmp.ne.s32.totalorder %s369_s25, %s509_s4  ;;  %p515_p2 = scmp.lt.s32.totalorder %s509_s4, %s509_s4 }
  0x1b   :  { %465 = vmatprep.subr.bf16.mxu0 %v533_v1 }
  0x1c   :  { %454 = vmatpush3.bf16.msra.mxu1 %v498_v18  ;;  %p516_p3 = por %p515_p2, %p514_p1 }
  0x1d   :  { %455 = vmatprep.subr.bf16.mxu1 %v533_v1 }
  0x1e   :  { %466 = vmatpush3.bf16.msra.mxu0 %v502_v22  ;;  %p517_p4 = pnand %p516_p3, %p510_p0 }
  0x1f   :  { %467 = vmatprep.subr.bf16.mxu0 %v533_v1 }
  0x20   :  { %456 = vmatpush3.bf16.msra.mxu1 %v499_v19 }
  0x21   :  { %457 = vmatprep.subr.bf16.mxu1 %v533_v1 }
  0x22   :  { %468 = vmatpush3.bf16.msra.mxu0 %v503_v23 }
  0x23   :  { %469 = vmatprep.subr.bf16.mxu0 %v533_v1 }
  0x24   :  { %458 = vmatpush3.bf16.msra.mxu1 %v500_v20 }
  0x26   :  { %470 = vmatpush3.bf16.msra.mxu0 %v504_v24 }
  0x27   :  { %471 = vmatprep.subr.bf16.mxu0 %v533_v1 }
  0x2a   :  { %472 = vmatpush3.bf16.msra.mxu0 %v505_v25 }
  0x2b   :  { %473 = vmatprep.subr.bf16.mxu0 %v533_v1 }
  0x2e   :  { %474 = vmatpush3.bf16.msra.mxu0 %v506_v26 }
  0x2f   :  { %475 = vmatprep.subr.bf16.mxu0 %v533_v1 }
  0x32   :  { %476 = vmatpush3.bf16.msra.mxu0 %v507_v35 }
  0x33   :  { %477 = vmatprep.subr.bf16.mxu0 %v533_v1 }
  0x36   :  { %478 = vmatpush3.bf16.msra.mxu0 %v508_v36 }
  0xec   :  { %v129_v28 = vpop.f32.mrb[0].mxu0 }
  0xed   :  { %v130_v29 = vadd.f32 %v376_v27, %v129_v28  ;;  %v441_v30 = vpop.f32.mrb[1].mxu0 }
  0xee   :  { %v132_v31 = vpop.f32.mrb[2].mxu0 }
  0xef   :  { %v135_v32 = vmax.f32 %v130_v29, 0.0  ;;  %v442_v33 = vpop.f32.mrb[3].mxu0 }
  0xf1   :  { %v136_v34 = vpack.c.bf16 %v135_v32, %v135_v32 }
  0xf3   :  { %460 = vmatmul.mubr.bf16.vlgmr.msra.gmra.mrb[0].mxu1 %v136_v34 }
 0x1c6   :  { %v242_v38 = vpop.f32.mrb[0].mxu1 }
 0x1c7   :  { %v243_v39 = vadd.f32 %v384_v37, %v242_v38  ;;  %v461_v40 = vpop.f32.mrb[1].mxu1 }
 0x1c8   :  { %v245_v41 = vpop.f32.mrb[2].mxu1 }
 0x1c9   :  { %v248_v42 = vmax.f32 %v243_v39, 0.0  ;;  %v462_v43 = vpop.f32.mrb[3].mxu1 }
 0x1cb   :  { %v249_v44 = vpack.c.bf16 %v248_v42, %v248_v42 }
 0x1cd   :  { %480 = vmatmul.mubr.bf16.vlgmr.msra.gmra.mrb[4].mxu0 %v249_v44 }
 0x2a0   :  { %v355_v46 = vpop.f32.mrb[4].mxu0 }
 0x2a1   :  { %v356_v47 = vadd.f32 %v393_v45, %v355_v46  ;;  %v481_v48 = vpop.f32.mrb[5].mxu0 }
 0x2a2   :  { %v358_v49 = vpop.f32.mrb[6].mxu0 }
 0x2a3   :  { %361 = vst.msk [vmem:[#allocation2] sm:$0xff] %vm84_vm3, %v356_v47  ;;  %v482_v50 = vpop.f32.mrb[7].mxu0 }
 0x2a4   :  { %520 = shalt.err (!%p517_p4)
}
 0x2a5   :  { %s521_s6 = scalar_lea.hbm %s704_s7, 128 }
 0x2a6   :  { %p522_p5 = scmp.ne.s32.totalorder %s704_s7, %s521_s6  ;;  %p525_p6 = scmp.lt.u32.totalorder %s521_s6, %s704_s7 }
 0x2a8   :  { %p527_p7 = pnand %p525_p6, %p522_p5 }
 0x2aa   :  { %530 = shalt.err (!%p527_p7)
}
 0x2ab   :  { %371 = dma.vmem_to_hbm [thread:$0]  %s369_s25, 128, %s704_s7, [#allocation3]  }
 0x2ac   :  { %531 = dma.done.wait [#allocation3], 128  }
 0x2ad   :  { %532 = vsyncadd [#allocation3], 4294967168 }
 0x2ae   :  { %375 = vsyncpa [#allocation3], 1 }

</bundles_post_ra>
